<compile_context>
chip_gen: v6e
topology: v6e:2x2x1
jax: 0.10.0
libtpu: 0.0.40
codegen_flags: <defaults>
</compile_context>

<pallas_src>
import math
import functools

import jax
import jax.numpy as jnp
from jax.experimental import pallas as pl
from jax.experimental.pallas import tpu as pltpu


def _mixedop_kernel(w_ref, *refs, k):
    # w_ref    : SMEM (k,) float32 -- final mixing weights (already softmaxed)
    # refs[:k] : VMEM (tm, N)      -- one tile per input tensor
    # refs[k]  : VMEM (tm, N)      -- output tile
    x_refs = refs[:k]
    o_ref = refs[k]

    acc = x_refs[0][...].astype(jnp.float32) * w_ref[0]
    for i in range(1, k):
        acc = acc + x_refs[i][...].astype(jnp.float32) * w_ref[i]
    o_ref[...] = acc.astype(o_ref.dtype)


def _pick_lane_width(padded_total):
    """Largest multiple of 128 (<= 1024) dividing the (already 128-padded)
    flattened size -> lane-dense, unmasked-wide stores."""
    for w in range(1024, 127, -128):
        if padded_total % w == 0:
            return w
    return 128  # unreachable: padded_total is a multiple of 128


def _choose_row_tile(M, target_tm, sublane, min_steps=8):
    """Sublane-aligned row tile: >= min_steps grid steps when possible,
    even step count preferred (v7x megacore), exact divisor of M preferred
    (no masked ragged last block)."""
    if M <= sublane:
        return M

    # Never collapse to a single pipeline step: cap the tile so the grid has
    # roughly `min_steps` steps whenever the row count allows it.
    cap = max(sublane, pl.cdiv(M, min_steps))
    target_tm = min(target_tm, cap)
    target_tm = max(sublane, (target_tm // sublane) * sublane)
    target_tm = min(target_tm, M)
    if target_tm == M:
        return M

    def steps(t):
        return pl.cdiv(M, t)

    # Prefer an exact divisor of M within ~25% below the target
    # (even step count first).
    lo = max(sublane, (int(target_tm * 0.75) // sublane) * sublane)
    best_div = None
    t = target_tm
    while t >= lo:
        if M % t == 0:
            if steps(t) % 2 == 0:
                return t
            if best_div is None:
                best_div = t
        t -= sublane

    # Otherwise force an even step count (ragged last block is masked).
    n = steps(target_tm)
    if n > 1 and n % 2 == 1:
        t_even = max(sublane, pl.cdiv(pl.cdiv(M, n + 1), sublane) * sublane)
        t_even = min(t_even, target_tm)
        if steps(t_even) % 2 == 0:
            return t_even

    if best_div is not None and steps(best_div) <= steps(target_tm) + 2:
        return best_div
    return target_tm


def mixed_op(xs, alphas=None, *, alpha_mamba=None,
             vmem_budget_bytes=5 * 1024 * 1024, in_buffers=2):
    """Pallas implementation of MixedOp.forward(xs)."""
    k = len(xs)
    orig_shape = xs[0].shape
    dtype = xs[0].dtype
    for x in xs:
        assert x.shape == orig_shape, "all MixedOp inputs must share a shape"
        assert x.dtype == dtype, "all MixedOp inputs must share a dtype"
    dtype_bytes = jnp.dtype(dtype).itemsize
    total = math.prod(orig_shape)

    # --- mixing weights: computed once (tiny scalar op), passed via SMEM ---
    if alpha_mamba is not None:
        assert k == 2, "fixed alpha_mamba path requires exactly 2 inputs"
        weights = jnp.asarray([alpha_mamba, 1.0 - alpha_mamba], dtype=jnp.float32)
    else:
        weights = jax.nn.softmax(alphas.astype(jnp.float32))

    # --- lane-dense 2D layout: last dim is ALWAYS a multiple of 128 ---------
    padded_total = ((total + 127) // 128) * 128
    pad = padded_total - total
    N = _pick_lane_width(padded_total)
    M = padded_total // N

    xs_flat = [x.reshape(-1) for x in xs]
    if pad:
        # Last resort: one-time pad so every store is unmasked & lane-dense.
        xs_flat = [jnp.pad(x, (0, pad)) for x in xs_flat]
    xs2d = [x.reshape(M, N) for x in xs_flat]

    # --- row-tile sizing ----------------------------------------------------
    # Per-row footprint: k inputs (in_buffers-deep) + 1 output (double
    # buffered) at the input dtype, plus ~2 live (tm, N) f32 accumulation
    # temporaries from the in-kernel weighted-sum chain.
    vmem_budget_bytes = min(vmem_budget_bytes, 24 * 1024 * 1024)  # v7x-safe
    sublane = {4: 8, 2: 16, 1: 32}.get(dtype_bytes, 8)
    bytes_per_row = (k * in_buffers + 2) * N * dtype_bytes + 2 * N * 4
    tm_budget = max(1, vmem_budget_bytes // bytes_per_row)
    tm = _choose_row_tile(M, tm_budget, sublane)

    grid = (pl.cdiv(M, tm),)

    # Derive the scoped-VMEM limit from the actual requirement (+50% slack),
    # never exceeding what is safe on v7x (64 MiB physical per TC).
    tile_bytes = tm * N * dtype_bytes
    vmem_need = (k * in_buffers + 2) * tile_bytes + 2 * tm * N * 4
    vmem_limit = min(56 * 1024 * 1024,
                     max(16 * 1024 * 1024, vmem_need + vmem_need // 2))

    cost = pl.CostEstimate(
        flops=2 * k * M * N,                             # mul + add per term
        transcendentals=0,
        bytes_accessed=(k + 1) * M * N * dtype_bytes,    # ideal HBM traffic
    )

    def _input_spec():
        if in_buffers != 2:
            return pl.BlockSpec((tm, N), lambda i: (i, 0),
                                pipeline_mode=pl.Buffered(in_buffers))
        return pl.BlockSpec((tm, N), lambda i: (i, 0))

    in_specs = [pl.BlockSpec(memory_space=pltpu.MemorySpace.SMEM)]  # weights
    in_specs += [_input_spec() for _ in range(k)]

    out2d = pl.pallas_call(
        functools.partial(_mixedop_kernel, k=k),
        out_shape=jax.ShapeDtypeStruct((M, N), dtype),
        grid=grid,
        in_specs=in_specs,
        out_specs=pl.BlockSpec((tm, N), lambda i: (i, 0)),
        compiler_params=pltpu.CompilerParams(
            dimension_semantics=("parallel",),   # megacore sharding on v7x
            vmem_limit_bytes=vmem_limit,
        ),
        cost_estimate=cost,
    )(weights, *xs2d)

    out_flat = out2d.reshape(-1)
    if pad:
        out_flat = out_flat[:total]
    return out_flat.reshape(orig_shape)


if __name__ == "__main__":
    key = jax.random.PRNGKey(0)

    # --- learned-alphas path (module __init__: alphas = zeros(k)) ----------
    B, S, H = 2, 8, 128
    k = 3
    keys = jax.random.split(key, k)
    xs = [jax.random.normal(keys[i], (B, S, H), dtype=jnp.float32)
          for i in range(k)]
    alphas = jnp.zeros((k,), dtype=jnp.float32)
    out = jax.block_until_ready(mixed_op(xs, alphas))
    w_ref = jax.nn.softmax(alphas)
    ref = sum(w_ref[i] * xs[i] for i in range(k))
    assert out.shape == (B, S, H)
    assert jnp.allclose(out, ref, atol=1e-5, rtol=1e-5), "softmax path mismatch"

    # --- larger tensor: exercises the multi-step (even, >=8) grid ----------
    Bm, Sm, Hm = 4, 64, 256
    keysm = jax.random.split(jax.random.PRNGKey(1), k)
    xsm = [jax.random.normal(keysm[i], (Bm, Sm, Hm), dtype=jnp.float32)
           for i in range(k)]
    alpham = jnp.array([0.5, -1.0, 0.25], dtype=jnp.float32)
    outm = jax.block_until_ready(mixed_op(xsm, alpham))
    wm = jax.nn.softmax(alpham)
    refm = sum(wm[i] * xsm[i] for i in range(k))
    assert jnp.allclose(outm, refm, atol=1e-5, rtol=1e-5), "multi-step grid mismatch"

    # --- fixed alpha_mamba path (k = 2, weights = [a, 1-a], no softmax) ----
    xs2 = xs[:2]
    alpha_mamba = 0.3
    out2 = jax.block_until_ready(mixed_op(xs2, None, alpha_mamba=alpha_mamba))
    ref2 = alpha_mamba * xs2[0] + (1.0 - alpha_mamba) * xs2[1]
    assert jnp.allclose(out2, ref2, atol=1e-5, rtol=1e-5), "fixed-alpha path mismatch"

    # --- bf16 path (16-row sublane packing + f32 accumulation) -------------
    xb = [x.astype(jnp.bfloat16) for x in xs]
    ab = jnp.array([0.1, -0.2, 0.3], dtype=jnp.float32)
    outb = jax.block_until_ready(mixed_op(xb, ab))
    wb = jax.nn.softmax(ab)
    refb = sum(wb[i] * xb[i].astype(jnp.float32) for i in range(k))
    assert outb.dtype == jnp.bfloat16
    assert jnp.allclose(outb.astype(jnp.float32), refb, atol=2e-2, rtol=2e-2), \
        "bf16 path mismatch"

    # --- padding path: flattened size not a multiple of 128 ----------------
    Hp = 100
    keysp = jax.random.split(jax.random.PRNGKey(2), k)
    xsp = [jax.random.normal(keysp[i], (B, S, Hp), dtype=jnp.float32)
           for i in range(k)]
    alphap = jnp.array([1.0, 0.0, -0.5], dtype=jnp.float32)
    outp = jax.block_until_ready(mixed_op(xsp, alphap))
    wp = jax.nn.softmax(alphap)
    refp = sum(wp[i] * xsp[i] for i in range(k))
    assert outp.shape == (B, S, Hp)
    assert jnp.allclose(outp, refp, atol=1e-5, rtol=1e-5), "padding path mismatch"

    print("KERNEL_OK")
</pallas_src>

<mosaic_0001>
module attributes {stable_mosaic.version = 11 : i64} {
  func.func @_mixedop_kernel(%arg0: i32, %arg1: memref<3xf32, #tpu.memory_space<smem>>, %arg2: memref<2x1024xf32, #tpu.memory_space<vmem>>, %arg3: memref<2x1024xf32, #tpu.memory_space<vmem>>, %arg4: memref<2x1024xf32, #tpu.memory_space<vmem>>, %arg5: memref<2x1024xf32, #tpu.memory_space<vmem>>) attributes {dimension_semantics = [#tpu.dimension_semantics<parallel>], iteration_bounds = array<i64: 1>, scalar_prefetch = 0 : i64, scratch_operands = 0 : i64, tpu.core_type = #tpu.core_type<tc>, window_params = [{transform_indices = @transform_0, window_bounds = array<i64: 3>}, {transform_indices = @transform_1, window_bounds = array<i64: 2, 1024>}, {transform_indices = @transform_2, window_bounds = array<i64: 2, 1024>}, {transform_indices = @transform_3, window_bounds = array<i64: 2, 1024>}, {transform_indices = @transform_4, window_bounds = array<i64: 2, 1024>}]} {
    %c0 = arith.constant 0 : index
    %c0_0 = arith.constant 0 : index
    %0 = vector.load %arg2[%c0, %c0_0] : memref<2x1024xf32, #tpu.memory_space<vmem>>, vector<2x1024xf32>
    %c0_1 = arith.constant 0 : index
    %1 = memref.load %arg1[%c0_1] : memref<3xf32, #tpu.memory_space<smem>>
    %2 = vector.broadcast %1 : f32 to vector<2x1024xf32>
    %3 = arith.mulf %0, %2 : vector<2x1024xf32>
    %c0_2 = arith.constant 0 : index
    %c0_3 = arith.constant 0 : index
    %4 = vector.load %arg3[%c0_2, %c0_3] : memref<2x1024xf32, #tpu.memory_space<vmem>>, vector<2x1024xf32>
    %c1 = arith.constant 1 : index
    %5 = memref.load %arg1[%c1] : memref<3xf32, #tpu.memory_space<smem>>
    %6 = vector.broadcast %5 : f32 to vector<2x1024xf32>
    %7 = arith.mulf %4, %6 : vector<2x1024xf32>
    %8 = arith.addf %3, %7 : vector<2x1024xf32>
    %c0_4 = arith.constant 0 : index
    %c0_5 = arith.constant 0 : index
    %9 = vector.load %arg4[%c0_4, %c0_5] : memref<2x1024xf32, #tpu.memory_space<vmem>>, vector<2x1024xf32>
    %c2 = arith.constant 2 : index
    %10 = memref.load %arg1[%c2] : memref<3xf32, #tpu.memory_space<smem>>
    %11 = vector.broadcast %10 : f32 to vector<2x1024xf32>
    %12 = arith.mulf %9, %11 : vector<2x1024xf32>
    %13 = arith.addf %8, %12 : vector<2x1024xf32>
    %c0_6 = arith.constant 0 : index
    %c0_7 = arith.constant 0 : index
    %14 = vector.load %arg5[%c0_6, %c0_7] : memref<2x1024xf32, #tpu.memory_space<vmem>>, vector<2x1024xf32>
    tpu.vector_store %arg5[%c0_6, %c0_7], %13 {strides = array<i32>} : memref<2x1024xf32, #tpu.memory_space<vmem>>, vector<2x1024xf32>,
    return
  }
  func.func @transform_0(%arg0: i32) -> i32 {
    %c0_i32 = arith.constant 0 : i32
    %c0_i32_0 = arith.constant 0 : i32
    return %c0_i32 : i32
  }
  func.func @transform_1(%arg0: i32) -> (i32, i32) {
    %c0_i32 = arith.constant 0 : i32
    %c0_i32_0 = arith.constant 0 : i32
    return %arg0, %c0_i32 : i32, i32
  }
  func.func @transform_2(%arg0: i32) -> (i32, i32) {
    %c0_i32 = arith.constant 0 : i32
    %c0_i32_0 = arith.constant 0 : i32
    return %arg0, %c0_i32 : i32, i32
  }
  func.func @transform_3(%arg0: i32) -> (i32, i32) {
    %c0_i32 = arith.constant 0 : i32
    %c0_i32_0 = arith.constant 0 : i32
    return %arg0, %c0_i32 : i32, i32
  }
  func.func @transform_4(%arg0: i32) -> (i32, i32) {
    %c0_i32 = arith.constant 0 : i32
    %c0_i32_0 = arith.constant 0 : i32
    return %arg0, %c0_i32 : i32, i32
  }
}

</mosaic_0001>

<bundles_post_ra>
// kernel: tpu_custom_call.1
= control target key start
LH: loop header
LB: loop body
LE: loop exit
PB: predicated region body
PF: predicated region fallthrough
CT: control target
= control target key end

     0   :  { %9 = vsyncpa [#allocation5], 0  ;;  %s253_s0 = inlined_call_operand.hbm [shape: f32[3], index: 0, kind: input, shape index: {}]   ;;  %s254_s1 = inlined_call_operand.hbm [shape: f32[2,1024], index: 1, kind: input, shape index: {}]   ;;  %s255_s2 = inlined_call_operand.hbm [shape: f32[2,1024], index: 2, kind: input, shape index: {}]   ;;  %s256_s3 = inlined_call_operand.hbm [shape: f32[2,1024], index: 3, kind: input, shape index: {}]   ;;  %s257_s4 = inlined_call_operand.hbm [shape: f32[2,1024], index: 4, kind: output, shape index: {}]  }
   0x1   :  { %10 = vsyncpa [#allocation3], 0 }
   0x2   :  { %11 = vsyncpa [#allocation8], 0 }
   0x3   :  { %12 = vsyncpa [#allocation4], 0  ;;  %s208_s15 = smov [#allocation7]   ;;  %s209_s17 = smov [#allocation6]  }
   0x4   :  { %s37_s16 = sshll.u32 %s208_s15, 4  ;;  %s27_s18 = sshll.u32 %s209_s17, 4  ;;  %s38_s16 = int_to_ptr.vmem [resolvable:$true] %s37_s16  ;;  %s28_s18 = int_to_ptr.vmem [resolvable:$true] %s27_s18 }
   0x5   :  { %s120_s19 = scalar_lea.vmem %s38_s16, 256  ;;  %p125_p1 = scmp.lt.s32.totalorder %s38_s16, %s38_s16 }
   0x6   :  { %p121_p0 = scmp.ne.s32.totalorder %s38_s16, %s120_s19  ;;  %p126_p2 = scmp.lt.s32.totalorder %s120_s19, %s120_s19 }
   0x8   :  { %p127_p3 = por %p126_p2, %p125_p1 }
   0xa   :  { %p128_p4 = pnand %p127_p3, %p121_p0 }
   0xc   :  { %131 = shalt.err (!%p128_p4)
}
   0xd   :  { %40 = dma.hbm_to_vmem [thread:$0]  %s255_s2, 256, %s38_s16, [#allocation8]  }
   0xe   :  { %s210_s22 = smov [#allocation2]   ;;  %s148_s25 = scalar_lea.vmem %s28_s18, 256 }
   0xf   :  { %20 = dma.hbm_to_smem %s253_s0, 16, %s210_s22, [#allocation5]  }
  0x10   :  { %p149_p5 = scmp.ne.s32.totalorder %s28_s18, %s148_s25  ;;  %p153_p6 = scmp.lt.s32.totalorder %s28_s18, %s28_s18 }
  0x11   :  { %p154_p7 = scmp.lt.s32.totalorder %s148_s25, %s148_s25 }
  0x13   :  { %p155_p8 = por %p154_p7, %p153_p6 }
  0x15   :  { %p156_p9 = pnand %p155_p8, %p149_p5 }
  0x17   :  { %159 = shalt.err (!%p156_p9)
}
  0x18   :  { %30 = dma.hbm_to_vmem [thread:$0]  %s254_s1, 256, %s28_s18, [#allocation3]  }
  0x19   :  { %s211_s28 = smov [#allocation9]  }
  0x1a   :  { %s47_s29 = sshll.u32 %s211_s28, 4  ;;  %s48_s29 = int_to_ptr.vmem [resolvable:$true] %s47_s29 }
  0x1b   :  { %s168_s2 = scalar_lea.vmem %s48_s29, 256  ;;  %p173_p11 = scmp.lt.s32.totalorder %s48_s29, %s48_s29 }
  0x1c   :  { %p169_p10 = scmp.ne.s32.totalorder %s48_s29, %s168_s2  ;;  %p174_p12 = scmp.lt.s32.totalorder %s168_s2, %s168_s2 }
  0x1e   :  { %p175_p13 = por %p174_p12, %p173_p11 }
  0x20   :  { %p176_p0 = pnand %p175_p13, %p169_p10 }
  0x22   :  { %179 = shalt.err (!%p176_p0)
}
  0x23   :  { %50 = dma.hbm_to_vmem [thread:$0]  %s256_s3, 256, %s48_s29, [#allocation8]  }
  0x24   :  { %200 = dma.done.wait [#allocation5], 16  }
  0x25   :  { %201 = vsyncadd [#allocation5], 4294967280 }
  0x26   :  { %202 = dma.done.wait [#allocation3], 256  }
  0x27   :  { %203 = vsyncadd [#allocation3], 4294967040 }
  0x28   :  { %204 = dma.done.wait [#allocation8], 512  }
  0x29   :  { %205 = vsyncadd [#allocation8], 4294966784 }
  0x2a   :  { %63 = sfence }
  0x2b   :  { %s66_s1 = sld [smem:[#allocation2]]  ;;  %v64_v0 = vld [vmem:[#allocation6] sm:$0xff]  ;;  %v65_v1 = vld [vmem:[#allocation6 + $0x8] sm:$0xff]  ;;  %v70_v2 = vld [vmem:[#allocation7] sm:$0xff]  ;;  %s212_s3 = smov [#allocation10]  }
  0x2c   :  { %s105_s5 = sld [smem:[#allocation2 + $0x1]]  ;;  %v71_v3 = vld [vmem:[#allocation7 + $0x8] sm:$0xff]  ;;  %v78_v5 = vld [vmem:[#allocation9] sm:$0xff]  ;;  %v79_v6 = vld [vmem:[#allocation9 + $0x8] sm:$0xff]  ;;  %s94_s7 = sshll.u32 %s212_s3, 4  ;;  %s95_s7 = int_to_ptr.vmem [resolvable:$true] %s94_s7 }
  0x2d   :  { %s106_s6 = sld [smem:[#allocation2 + $0x2]]  ;;  %s180_s8 = scalar_lea.vmem %s95_s7, 256 }
  0x2e   :  { %p181_p1 = scmp.ne.s32.totalorder %s95_s7, %s180_s8  ;;  %p185_p2 = scmp.lt.s32.totalorder %s95_s7, %s95_s7 }
  0x2f   :  { %p186_p3 = scmp.lt.s32.totalorder %s180_s8, %s180_s8 }
  0x31   :  { %v67_v4 = vstv %s66_s1  ;;  %p187_p4 = por %p186_p3, %p185_p2 }
  0x32   :  { %v68_v7 = vmul.f32 %v67_v4, %v64_v0  ;;  %v73_v8 = vstv %s105_s5  ;;  %v69_v9 = vmul.f32 %v67_v4, %v65_v1 }
  0x33   :  { %v74_v10 = vmul.f32 %v73_v8, %v70_v2  ;;  %v81_v11 = vstv %s106_s6  ;;  %v75_v12 = vmul.f32 %v73_v8, %v71_v3  ;;  %p188_p5 = pnand %p187_p4, %p181_p1 }
  0x34   :  { %v82_v13 = vmul.f32 %v81_v11, %v78_v5  ;;  %v83_v14 = vmul.f32 %v81_v11, %v79_v6 }
  0x35   :  { %v76_v15 = vadd.f32 %v74_v10, %v68_v7  ;;  %v77_v16 = vadd.f32 %v75_v12, %v69_v9 }
  0x37   :  { %v84_v17 = vadd.f32 %v82_v13, %v76_v15  ;;  %v85_v18 = vadd.f32 %v83_v14, %v77_v16 }
  0x39   :  { %86 = vst [vmem:[#allocation10] sm:$0xff] %v84_v17  ;;  %87 = vst [vmem:[#allocation10 + $0x8] sm:$0xff] %v85_v18 }
  0x3a   :  { %191 = shalt.err (!%p188_p5)
}
  0x3b   :  { %97 = dma.vmem_to_hbm [thread:$0]  %s95_s7, 256, %s257_s4, [#allocation4]  }
  0x3c   :  { %206 = dma.done.wait [#allocation4], 256  }
  0x3d   :  { %207 = vsyncadd [#allocation4], 4294967040 }
  0x3e   :  { %101 = vsyncpa [#allocation3], 1 }
  0x3f   :  { %102 = vsyncpa [#allocation8], 1 }
  0x40   :  { %103 = vsyncpa [#allocation4], 1 }
  0x41   :  { %104 = vsyncpa [#allocation5], 1 }

</bundles_post_ra>
